<compile_context>
chip_gen: v7x
topology: tpu7x:2x2x1
jax: 0.10.0
libtpu: 0.0.40
codegen_flags: <defaults>
</compile_context>

<pallas_src>
import math

import jax
import jax.numpy as jnp
from jax.experimental import pallas as pl
from jax.experimental.pallas import tpu as pltpu


def _round_up(x, n):
    return ((x + n - 1) // n) * n


def _sublane_pack(dtype):
    # Sublane packing: 8 for 4-byte, 16 for 2-byte, 32 for 1-byte dtypes.
    return max(8, 32 // jnp.dtype(dtype).itemsize)


def _vmem_budgets():
    """Returns (explicit vmem_limit_bytes, per-step block budget incl. 2x buffering)."""
    try:
        cap = int(pltpu.get_tpu_info().vmem_capacity_bytes)
    except Exception:
        cap = 128 * 1024 * 1024
    # ~3/4 of physical VMEM as the explicit scoped limit, capped at 100 MiB:
    #   v5e/v6e (128 MiB) -> 96 MiB limit, 48 MiB step budget
    #   v7x     ( 64 MiB) -> 48 MiB limit, 24 MiB step budget
    limit = min((cap * 3) // 4, 100 * 1024 * 1024)
    return limit, limit // 2


def _concat_lanes_kernel(*refs):
    """2-D case: input blocks (TM, W_i) -> single full-block store (TM, sum W_i)."""
    *in_refs, out_ref = refs
    out_ref[...] = jnp.concatenate(
        [r[...].astype(out_ref.dtype) for r in in_refs], axis=-1)


def _concat_mid_kernel(*refs):
    """3-D case: input blocks (TM, C_i, TS) -> output block (TM, sum C_i, TS)."""
    *in_refs, out_ref = refs
    off = 0
    for r in in_refs:
        c = r.shape[1]
        out_ref[:, off:off + c, :] = r[...].astype(out_ref.dtype)
        off += c


def concatenate(xs, dim=-1, *, min_pallas_bytes=1 << 20):
    """Pallas equivalent of torch.cat(xs, dim=dim)."""
    xs = list(xs)
    assert len(xs) >= 1, "torch.cat needs at least one tensor"
    ndim = xs[0].ndim
    axis = dim % ndim
    for x in xs:
        assert x.ndim == ndim
        assert x.shape[:axis] == xs[0].shape[:axis]
        assert x.shape[axis + 1:] == xs[0].shape[axis + 1:]

    out_dtype = jnp.result_type(*[x.dtype for x in xs])
    out_shape = (xs[0].shape[:axis]
                 + (sum(int(x.shape[axis]) for x in xs),)
                 + xs[0].shape[axis + 1:])

    # Degenerate / trivial cases.
    xs = [x for x in xs if x.shape[axis] > 0]
    if not xs or any(d == 0 for d in out_shape):
        return jnp.zeros(out_shape, out_dtype)
    if len(xs) == 1:
        return xs[0].reshape(out_shape).astype(out_dtype)

    out_isize = jnp.dtype(out_dtype).itemsize
    out_bytes = int(math.prod(out_shape)) * out_isize
    in_bytes = sum(int(x.size) * jnp.dtype(x.dtype).itemsize for x in xs)
    cost = pl.CostEstimate(flops=0, transcendentals=0,
                           bytes_accessed=int(in_bytes + out_bytes))

    # Tiny copies: pallas_call dispatch/step overhead dominates.
    if out_bytes < min_pallas_bytes:
        return jnp.concatenate([x.astype(out_dtype) for x in xs], axis=axis)

    vmem_limit, step_budget = _vmem_budgets()
    prefix = xs[0].shape[:axis]
    suffix = xs[0].shape[axis + 1:]
    m = int(math.prod(prefix))
    s = int(math.prod(suffix))
    c_sizes = [int(x.shape[axis]) for x in xs]
    c_total = sum(c_sizes)
    in_dtypes = [x.dtype for x in xs]

    if s == 1:
        # Concat axis is (effectively) last: flatten to 2-D (M, W_i); the
        # concat dim lands on lanes.  Reshapes are metadata-only (row-major).
        xs2 = [x.reshape(m, c) for x, c in zip(xs, c_sizes)]
        # Per-row footprint incl. lane padding and 2x double-buffering.
        bpr = 0
        for c, dt in zip(c_sizes, in_dtypes):
            bpr += _round_up(c, 128) * jnp.dtype(dt).itemsize
        bpr += _round_up(c_total, 128) * out_isize
        bpr *= 2
        tm_raw = step_budget // bpr
        align = max(_sublane_pack(dt) for dt in in_dtypes + [out_dtype])
        if tm_raw >= m:
            tm = m                                 # single full-dim block (legal)
        elif tm_raw >= 8:
            tm = max(8, (tm_raw // align) * align)  # sublane-aligned, never > budget
        else:
            # Rows so wide that even an 8-row tile blows the budget (rare);
            # XLA's native concatenate is already a DMA-level copy here.
            return jnp.concatenate([x.astype(out_dtype) for x in xs], axis=axis)

        grid = (pl.cdiv(m, tm),)
        in_specs = [pl.BlockSpec((tm, c), lambda i: (i, 0)) for c in c_sizes]
        out_specs = pl.BlockSpec((tm, c_total), lambda i: (i, 0))
        out2d = pl.pallas_call(
            _concat_lanes_kernel,
            out_shape=jax.ShapeDtypeStruct((m, c_total), out_dtype),
            grid=grid,
            in_specs=in_specs,
            out_specs=out_specs,
            cost_estimate=cost,
            compiler_params=pltpu.CompilerParams(
                dimension_semantics=("parallel",),
                vmem_limit_bytes=vmem_limit),
        )(*xs2)
        return out2d.reshape(out_shape)

    # General axis: 3-D (M, C_i, S) layout — prefix rows, whole concat dim in
    # the middle (static output offsets), suffix on lanes.  Only free reshapes.
    xs3 = [x.reshape(m, c, s) for x, c in zip(xs, c_sizes)]

    def footprint_per_row(ts):
        # Bytes per unit of tm for one grid step, incl. sublane/lane padding
        # and 2x double-buffering, for all inputs + output.
        tot = 0
        for c, dt in zip(c_sizes, in_dtypes):
            isz = jnp.dtype(dt).itemsize
            tot += _round_up(c, _sublane_pack(dt)) * _round_up(ts, 128) * isz
        tot += (_round_up(c_total, _sublane_pack(out_dtype))
                * _round_up(ts, 128) * out_isize)
        return 2 * tot

    # Grow ts (the HBM-contiguous lane axis) first: full s if it fits,
    # otherwise the largest multiple of 128 that fits the budget.
    if s <= 128 or footprint_per_row(s) <= step_budget:
        ts = s
    else:
        per128 = footprint_per_row(128)
        k = max(1, step_budget // per128)
        ts = max(128, min((s // 128) * 128, k * 128))
    bpr = footprint_per_row(ts)
    if bpr > step_budget and ts > 128 and ts != s:
        ts = 128
        bpr = footprint_per_row(ts)
    if bpr > step_budget:
        # Even a minimal (1, c_i, ts) block blows the budget (huge concat dim).
        return jnp.concatenate([x.astype(out_dtype) for x in xs], axis=axis)
    tm = max(1, min(m, step_budget // bpr))   # leading dim: no alignment rule

    grid = (pl.cdiv(m, tm), pl.cdiv(s, ts))
    in_specs = [pl.BlockSpec((tm, c, ts), lambda i, j: (i, 0, j))
                for c in c_sizes]
    out_specs = pl.BlockSpec((tm, c_total, ts), lambda i, j: (i, 0, j))
    out3d = pl.pallas_call(
        _concat_mid_kernel,
        out_shape=jax.ShapeDtypeStruct((m, c_total, s), out_dtype),
        grid=grid,
        in_specs=in_specs,
        out_specs=out_specs,
        cost_estimate=cost,
        compiler_params=pltpu.CompilerParams(
            dimension_semantics=("parallel", "parallel"),
            vmem_limit_bytes=vmem_limit),
    )(*xs3)
    return out3d.reshape(out_shape)


if __name__ == "__main__":
    key = jax.random.PRNGKey(0)
    k1, k2, k3, k4, k5, k6 = jax.random.split(key, 6)

    # 1) Default dim=-1 concat (2-D / lane path). min_pallas_bytes=0 forces the
    #    Pallas kernel even at these small test shapes.
    a = jax.random.normal(k1, (2, 4, 16, 16), dtype=jnp.float32)
    b = jax.random.normal(k2, (2, 4, 16, 8), dtype=jnp.float32)
    c = jax.random.normal(k3, (2, 4, 16, 16), dtype=jnp.float32)
    out = jax.block_until_ready(concatenate([a, b, c], dim=-1, min_pallas_bytes=0))
    ref = jnp.concatenate([a, b, c], axis=-1)
    assert out.shape == ref.shape == (2, 4, 16, 40)
    assert jnp.array_equal(out, ref)

    # 2) Channel concat (dim=1) exercises the general-axis 3-D path.
    d = jax.random.normal(k4, (2, 4, 16, 16), dtype=jnp.float32)
    e = jax.random.normal(k5, (2, 3, 16, 16), dtype=jnp.float32)
    out2 = jax.block_until_ready(concatenate([d, e], dim=1, min_pallas_bytes=0))
    ref2 = jnp.concatenate([d, e], axis=1)
    assert out2.shape == ref2.shape == (2, 7, 16, 16)
    assert jnp.array_equal(out2, ref2)

    # 3) Mixed dtypes: promotion is fused into the kernel (per-block astype).
    f = jax.random.normal(k6, (2, 4, 16, 16), dtype=jnp.bfloat16)
    out3 = jax.block_until_ready(concatenate([a, f], dim=-1, min_pallas_bytes=0))
    ref3 = jnp.concatenate([a, f.astype(jnp.float32)], axis=-1)
    assert out3.dtype == jnp.float32
    assert jnp.array_equal(out3, ref3)

    # 4) Small-output default path (XLA fallback) still matches.
    out4 = jax.block_until_ready(concatenate([a, c], dim=0))
    assert jnp.array_equal(out4, jnp.concatenate([a, c], axis=0))

    print("KERNEL_OK")
</pallas_src>

<mosaic_0001>
module attributes {stable_mosaic.version = 11 : i64} {
  func.func @_concat_lanes_kernel(%arg0: i32, %arg1: memref<128x16xf32, #tpu.memory_space<vmem>>, %arg2: memref<128x8xf32, #tpu.memory_space<vmem>>, %arg3: memref<128x16xf32, #tpu.memory_space<vmem>>, %arg4: memref<128x40xf32, #tpu.memory_space<vmem>>) attributes {dimension_semantics = [#tpu.dimension_semantics<parallel>], iteration_bounds = array<i64: 1>, scalar_prefetch = 0 : i64, scratch_operands = 0 : i64, tpu.core_type = #tpu.core_type<tc>, window_params = [{transform_indices = @transform_0, window_bounds = array<i64: 128, 16>}, {transform_indices = @transform_1, window_bounds = array<i64: 128, 8>}, {transform_indices = @transform_2, window_bounds = array<i64: 128, 16>}, {transform_indices = @transform_3, window_bounds = array<i64: 128, 40>}]} {
    %c0 = arith.constant 0 : index
    %c0_0 = arith.constant 0 : index
    %0 = vector.load %arg1[%c0, %c0_0] : memref<128x16xf32, #tpu.memory_space<vmem>>, vector<128x16xf32>
    %c0_1 = arith.constant 0 : index
    %c0_2 = arith.constant 0 : index
    %1 = vector.load %arg2[%c0_1, %c0_2] : memref<128x8xf32, #tpu.memory_space<vmem>>, vector<128x8xf32>
    %c0_3 = arith.constant 0 : index
    %c0_4 = arith.constant 0 : index
    %2 = vector.load %arg3[%c0_3, %c0_4] : memref<128x16xf32, #tpu.memory_space<vmem>>, vector<128x16xf32>
    %3 = tpu.concatenate %0, %1, %2 in 1 : vector<128x16xf32>, vector<128x8xf32>, vector<128x16xf32> -> vector<128x40xf32>
    %c0_5 = arith.constant 0 : index
    %c0_6 = arith.constant 0 : index
    %4 = vector.load %arg4[%c0_5, %c0_6] : memref<128x40xf32, #tpu.memory_space<vmem>>, vector<128x40xf32>
    tpu.vector_store %arg4[%c0_5, %c0_6], %3 {strides = array<i32>} : memref<128x40xf32, #tpu.memory_space<vmem>>, vector<128x40xf32>,
    return
  }
  func.func @transform_0(%arg0: i32) -> (i32, i32) {
    %c0_i32 = arith.constant 0 : i32
    %c0_i32_0 = arith.constant 0 : i32
    return %arg0, %c0_i32 : i32, i32
  }
  func.func @transform_1(%arg0: i32) -> (i32, i32) {
    %c0_i32 = arith.constant 0 : i32
    %c0_i32_0 = arith.constant 0 : i32
    return %arg0, %c0_i32 : i32, i32
  }
  func.func @transform_2(%arg0: i32) -> (i32, i32) {
    %c0_i32 = arith.constant 0 : i32
    %c0_i32_0 = arith.constant 0 : i32
    return %arg0, %c0_i32 : i32, i32
  }
  func.func @transform_3(%arg0: i32) -> (i32, i32) {
    %c0_i32 = arith.constant 0 : i32
    %c0_i32_0 = arith.constant 0 : i32
    return %arg0, %c0_i32 : i32, i32
  }
}

</mosaic_0001>

<bundles_post_ra>
// kernel: tpu_custom_call.1
= control target key start
LH: loop header
LB: loop body
LE: loop exit
PB: predicated region body
PF: predicated region fallthrough
CT: control target
= control target key end

     0   :  { %8 = vsyncpa [#allocation3], 0  ;;  %s558_s0 = inlined_call_operand.hbm [shape: f32[128,16], index: 0, kind: input, shape index: {}]   ;;  %s559_s1 = inlined_call_operand.hbm [shape: f32[128,8], index: 1, kind: input, shape index: {}]   ;;  %s560_s2 = inlined_call_operand.hbm [shape: f32[128,16], index: 2, kind: input, shape index: {}]   ;;  %s561_s3 = inlined_call_operand.hbm [shape: f32[128,40], index: 3, kind: output, shape index: {}]  }
   0x1   :  { %9 = vsyncpa [#allocation6], 0 }
   0x2   :  { %10 = vsyncpa [#allocation4], 0  ;;  %s403_s12 = smov [#allocation5]   ;;  %s404_s14 = smov [#allocation2]  }
   0x3   :  { %s28_s13 = sshll.u32 %s403_s12, 4  ;;  %s16_s15 = sshll.u32 %s404_s14, 4  ;;  %s29_s13 = int_to_ptr.vmem [resolvable:$true] %s28_s13  ;;  %s431_s15 = int_to_ptr.vmem [resolvable:$true] %s16_s15 }
   0x4   :  { %s309_s18 = scalar_lea.hbm %s559_s1, 2048 }
   0x5   :  { %p310_p0 = scmp.ne.s32.totalorder %s559_s1, %s309_s18  ;;  %p313_p1 = scmp.lt.u32.totalorder %s309_s18, %s559_s1 }
   0x7   :  { %p315_p2 = pnand %p313_p1, %p310_p0 }
   0x9   :  { %318 = shalt.err (!%p315_p2)
}
   0xa   :  { %s319_s23 = scalar_lea.vmem %s29_s13, 2048  ;;  %p324_p4 = scmp.lt.s32.totalorder %s29_s13, %s29_s13 }
   0xb   :  { %p320_p3 = scmp.ne.s32.totalorder %s29_s13, %s319_s23  ;;  %p325_p5 = scmp.lt.s32.totalorder %s319_s23, %s319_s23 }
   0xd   :  { %p326_p6 = por %p325_p5, %p324_p4 }
   0xf   :  { %p327_p7 = pnand %p326_p6, %p320_p3 }
  0x11   :  { %330 = shalt.err (!%p327_p7)
}
  0x12   :  { %s405_s24 = smov 128   ;;  %s406_s25 = smov 8  }
  0x13   :  { %34 = dma.hbm_to_vmem [thread:$0]  %s559_s1, 2048, %s29_s13, [#allocation6], %s405_s24, %s405_s24, %s406_s25  }
  0x14   :  { %s331_s30 = scalar_lea.hbm %s558_s0, 2048 }
  0x15   :  { %p332_p8 = scmp.ne.s32.totalorder %s558_s0, %s331_s30  ;;  %p335_p9 = scmp.lt.u32.totalorder %s331_s30, %s558_s0 }
  0x17   :  { %p337_p10 = pnand %p335_p9, %p332_p8 }
  0x19   :  { %340 = shalt.err (!%p337_p10)
}
  0x1a   :  { %s341_s8 = scalar_lea.vmem %s431_s15, 2048  ;;  %p346_p12 = scmp.lt.s32.totalorder %s431_s15, %s431_s15 }
  0x1b   :  { %p342_p11 = scmp.ne.s32.totalorder %s431_s15, %s341_s8  ;;  %p347_p13 = scmp.lt.s32.totalorder %s341_s8, %s341_s8 }
  0x1d   :  { %p348_p0 = por %p347_p13, %p346_p12 }
  0x1f   :  { %p349_p1 = pnand %p348_p0, %p342_p11 }
  0x21   :  { %352 = shalt.err (!%p349_p1)
}
  0x22   :  { %22 = dma.hbm_to_vmem [thread:$0]  %s558_s0, 2048, %s431_s15, [#allocation3], %s405_s24, %s405_s24, %s406_s25  }
  0x23   :  { %s407_s10 = smov [#allocation7]   ;;  %s353_s14 = scalar_lea.hbm %s560_s2, 2048 }
  0x24   :  { %s40_s11 = sshll.u32 %s407_s10, 4  ;;  %p354_p2 = scmp.ne.s32.totalorder %s560_s2, %s353_s14  ;;  %s41_s11 = int_to_ptr.vmem [resolvable:$true] %s40_s11 }
  0x25   :  { %p357_p3 = scmp.lt.u32.totalorder %s353_s14, %s560_s2 }
  0x27   :  { %p359_p4 = pnand %p357_p3, %p354_p2 }
  0x29   :  { %362 = shalt.err (!%p359_p4)
}
  0x2a   :  { %s363_s20 = scalar_lea.vmem %s41_s11, 2048  ;;  %p368_p6 = scmp.lt.s32.totalorder %s41_s11, %s41_s11 }
  0x2b   :  { %p364_p5 = scmp.ne.s32.totalorder %s41_s11, %s363_s20  ;;  %p369_p7 = scmp.lt.s32.totalorder %s363_s20, %s363_s20 }
  0x2d   :  { %p370_p8 = por %p369_p7, %p368_p6 }
  0x2f   :  { %p371_p9 = pnand %p370_p8, %p364_p5 }
  0x31   :  { %374 = shalt.err (!%p371_p9)
}
  0x32   :  { %46 = dma.hbm_to_vmem [thread:$0]  %s560_s2, 2048, %s41_s11, [#allocation6], %s405_s24, %s405_s24, %s406_s25  }
  0x33   :  { %397 = dma.done.wait [#allocation3], 2048  }
  0x34   :  { %398 = vsyncadd [#allocation3], 4294965248 }
  0x35   :  { %399 = dma.done.wait [#allocation6], 4096  }
  0x36   :  { %400 = vsyncadd [#allocation6], 4294963200  ;;  %v74_v0 = vld [vmem:[#allocation5 + $0x10] sm:$0xff]  ;;  %v72_v1 = vld [vmem:[#allocation5] sm:$0xff]  ;;  %s408_s21 = smov 16   ;;  %s409_s2 = smov 24  }
  0x37   :  { %124 = vrot.lane.b32.xlu1 %v74_v0, %s408_s21  ;;  %120 = vrot.lane.b32.xlu0 %v72_v1, %s408_s21  ;;  %v75_v2 = vld [vmem:[#allocation5 + $0x18] sm:$0xff]  ;;  %v73_v3 = vld [vmem:[#allocation5 + $0x8] sm:$0xff]  ;;  %v76_v5 = vld [vmem:[#allocation5 + $0x20] sm:$0xff]  ;;  %vm232_vm0 = vcmask 130048   ;;  %vm249_vm1 = vcmask 195584   ;;  %vm266_vm2 = vcmask 326656  }
  0x38   :  { %v77_v4 = vld [vmem:[#allocation5 + $0x28] sm:$0xff]  ;;  %v79_v6 = vld [vmem:[#allocation5 + $0x38] sm:$0xff]  ;;  %v78_v7 = vld [vmem:[#allocation5 + $0x30] sm:$0xff]  ;;  %s410_s22 = smov [#allocation8]  }
  0x39   :  { %v81_v8 = vld [vmem:[#allocation5 + $0x48] sm:$0xff]  ;;  %v80_v9 = vld [vmem:[#allocation5 + $0x40] sm:$0xff]  ;;  %v83_v10 = vld [vmem:[#allocation5 + $0x58] sm:$0xff]  ;;  %s288_s23 = sshll.u32 %s410_s22, 4  ;;  %s289_s23 = int_to_ptr.vmem [resolvable:$true] %s288_s23 }
  0x3a   :  { %v82_v11 = vld [vmem:[#allocation5 + $0x50] sm:$0xff]  ;;  %v85_v12 = vld [vmem:[#allocation5 + $0x68] sm:$0xff]  ;;  %v84_v13 = vld [vmem:[#allocation5 + $0x60] sm:$0xff]  ;;  %s375_s26 = scalar_lea.vmem %s289_s23, 2048  ;;  %p380_p11 = scmp.lt.s32.totalorder %s289_s23, %s289_s23 }
  0x3b   :  { %126 = vrot.lane.b32.xlu1 %v75_v2, %s408_s21  ;;  %122 = vrot.lane.b32.xlu0 %v73_v3, %s408_s21  ;;  %v87_v14 = vld [vmem:[#allocation5 + $0x78] sm:$0xff]  ;;  %v86_v15 = vld [vmem:[#allocation5 + $0x70] sm:$0xff]  ;;  %v89_v16 = vld [vmem:[#allocation7 + $0x8] sm:$0xff]  ;;  %p376_p10 = scmp.ne.s32.totalorder %s289_s23, %s375_s26  ;;  %p381_p12 = scmp.lt.s32.totalorder %s375_s26, %s375_s26 }
  0x3c   :  { %v88_v17 = vld [vmem:[#allocation7] sm:$0xff]  ;;  %v91_v18 = vld [vmem:[#allocation7 + $0x18] sm:$0xff]  ;;  %v90_v19 = vld [vmem:[#allocation7 + $0x10] sm:$0xff] }
  0x3d   :  { %v93_v20 = vld [vmem:[#allocation7 + $0x28] sm:$0xff]  ;;  %v92_v21 = vld [vmem:[#allocation7 + $0x20] sm:$0xff]  ;;  %v95_v22 = vld [vmem:[#allocation7 + $0x38] sm:$0xff]  ;;  %p382_p13 = por %p381_p12, %p380_p11 }
  0x3e   :  { %v94_v23 = vld [vmem:[#allocation7 + $0x30] sm:$0xff]  ;;  %v97_v24 = vld [vmem:[#allocation7 + $0x48] sm:$0xff]  ;;  %v96_v25 = vld [vmem:[#allocation7 + $0x40] sm:$0xff] }
  0x3f   :  { %130 = vrot.lane.b32.xlu1 %v77_v4, %s408_s21  ;;  %128 = vrot.lane.b32.xlu0 %v76_v5, %s408_s21  ;;  %v99_v26 = vld [vmem:[#allocation7 + $0x58] sm:$0xff]  ;;  %v98_v27 = vld [vmem:[#allocation7 + $0x50] sm:$0xff]  ;;  %v101_v28 = vld [vmem:[#allocation7 + $0x68] sm:$0xff]  ;;  %p383_p0 = pnand %p382_p13, %p376_p10 }
  0x40   :  { %v100_v29 = vld [vmem:[#allocation7 + $0x60] sm:$0xff]  ;;  %v103_v30 = vld [vmem:[#allocation7 + $0x78] sm:$0xff]  ;;  %v102_v31 = vld [vmem:[#allocation7 + $0x70] sm:$0xff] }
  0x41   :  { %v56_v48 = vld [vmem:[#allocation2] sm:$0xff]  ;;  %v57_v49 = vld [vmem:[#allocation2 + $0x8] sm:$0xff]  ;;  %v58_v54 = vld [vmem:[#allocation2 + $0x10] sm:$0xff] }
  0x42   :  { %v59_v55 = vld [vmem:[#allocation2 + $0x18] sm:$0xff]  ;;  %v61_v62 = vld [vmem:[#allocation2 + $0x28] sm:$0xff]  ;;  %v60_v63 = vld [vmem:[#allocation2 + $0x20] sm:$0xff] }
  0x43   :  { %134 = vrot.lane.b32.xlu1 %v79_v6, %s408_s21  ;;  %132 = vrot.lane.b32.xlu0 %v78_v7, %s408_s21  ;;  %v63_v6 = vld [vmem:[#allocation2 + $0x38] sm:$0xff]  ;;  %v62_v7 = vld [vmem:[#allocation2 + $0x30] sm:$0xff] }
  0x47   :  { %138 = vrot.lane.b32.xlu1 %v81_v8, %s408_s21  ;;  %136 = vrot.lane.b32.xlu0 %v80_v9, %s408_s21 }
  0x4b   :  { %142 = vrot.lane.b32.xlu1 %v83_v10, %s408_s21  ;;  %140 = vrot.lane.b32.xlu0 %v82_v11, %s408_s21 }
  0x4f   :  { %146 = vrot.lane.b32.xlu1 %v85_v12, %s408_s21  ;;  %144 = vrot.lane.b32.xlu0 %v84_v13, %s408_s21 }
  0x53   :  { %150 = vrot.lane.b32.xlu1 %v87_v14, %s408_s21  ;;  %148 = vrot.lane.b32.xlu0 %v86_v15, %s408_s21  ;;  %v65_v14 = vld [vmem:[#allocation2 + $0x48] sm:$0xff]  ;;  %v64_v15 = vld [vmem:[#allocation2 + $0x40] sm:$0xff] }
  0x57   :  { %186 = vrot.lane.b32.xlu1 %v89_v16, %s409_s2  ;;  %184 = vrot.lane.b32.xlu0 %v88_v17, %s409_s2 }
  0x5b   :  { %190 = vrot.lane.b32.xlu1 %v91_v18, %s409_s2  ;;  %188 = vrot.lane.b32.xlu0 %v90_v19, %s409_s2 }
  0x5f   :  { %194 = vrot.lane.b32.xlu1 %v93_v20, %s409_s2  ;;  %192 = vrot.lane.b32.xlu0 %v92_v21, %s409_s2 }
  0x63   :  { %198 = vrot.lane.b32.xlu1 %v95_v22, %s409_s2  ;;  %196 = vrot.lane.b32.xlu0 %v94_v23, %s409_s2  ;;  %v67_v22 = vld [vmem:[#allocation2 + $0x58] sm:$0xff]  ;;  %v66_v23 = vld [vmem:[#allocation2 + $0x50] sm:$0xff] }
  0x67   :  { %202 = vrot.lane.b32.xlu1 %v97_v24, %s409_s2  ;;  %200 = vrot.lane.b32.xlu0 %v96_v25, %s409_s2 }
  0x6b   :  { %206 = vrot.lane.b32.xlu1 %v99_v26, %s409_s2  ;;  %204 = vrot.lane.b32.xlu0 %v98_v27, %s409_s2 }
  0x6f   :  { %210 = vrot.lane.b32.xlu1 %v101_v28, %s409_s2  ;;  %208 = vrot.lane.b32.xlu0 %v100_v29, %s409_s2 }
  0x73   :  { %214 = vrot.lane.b32.xlu1 %v103_v30, %s409_s2  ;;  %212 = vrot.lane.b32.xlu0 %v102_v31, %s409_s2  ;;  %v69_v30 = vld [vmem:[#allocation2 + $0x68] sm:$0xff]  ;;  %v68_v31 = vld [vmem:[#allocation2 + $0x60] sm:$0xff] }
  0xa9   :  { %v125_v32 = vpop.permute.xlu1 %124  ;;  %v121_v33 = vpop.permute.xlu0 %120 }
  0xaa   :  { %v233_v50 = vsel %vm232_vm0, %v56_v48, %v121_v33  ;;  %v235_v58 = vsel %vm232_vm0, %v58_v54, %v125_v32 }
  0xad   :  { %v127_v34 = vpop.permute.xlu1 %126  ;;  %v123_v35 = vpop.permute.xlu0 %122 }
  0xae   :  { %v234_v51 = vsel %vm232_vm0, %v57_v49, %v123_v35  ;;  %v236_v59 = vsel %vm232_vm0, %v59_v55, %v127_v34 }
  0xb1   :  { %v131_v36 = vpop.permute.xlu1 %130  ;;  %v129_v37 = vpop.permute.xlu0 %128 }
  0xb2   :  { %v238_v2 = vsel %vm232_vm0, %v61_v62, %v131_v36  ;;  %v237_v3 = vsel %vm232_vm0, %v60_v63, %v129_v37 }
  0xb5   :  { %v135_v38 = vpop.permute.xlu1 %134  ;;  %v133_v39 = vpop.permute.xlu0 %132 }
  0xb6   :  { %v240_v10 = vsel %vm232_vm0, %v63_v6, %v135_v38  ;;  %v239_v11 = vsel %vm232_vm0, %v62_v7, %v133_v39  ;;  %v71_v38 = vld [vmem:[#allocation2 + $0x78] sm:$0xff]  ;;  %v70_v39 = vld [vmem:[#allocation2 + $0x70] sm:$0xff] }
  0xb9   :  { %v139_v40 = vpop.permute.xlu1 %138  ;;  %v137_v41 = vpop.permute.xlu0 %136 }
  0xba   :  { %v242_v18 = vsel %vm232_vm0, %v65_v14, %v139_v40  ;;  %v241_v19 = vsel %vm232_vm0, %v64_v15, %v137_v41 }
  0xbd   :  { %v143_v42 = vpop.permute.xlu1 %142  ;;  %v141_v43 = vpop.permute.xlu0 %140 }
  0xbe   :  { %v244_v26 = vsel %vm232_vm0, %v67_v22, %v143_v42  ;;  %v243_v27 = vsel %vm232_vm0, %v66_v23, %v141_v43 }
  0xc1   :  { %v483_v44 = vpop.permute.xlu1 %146  ;;  %v485_v45 = vpop.permute.xlu0 %144 }
  0xc2   :  { %v246_v34 = vsel %vm232_vm0, %v69_v30, %v483_v44  ;;  %v245_v35 = vsel %vm232_vm0, %v68_v31, %v485_v45 }
  0xc5   :  { %v487_v46 = vpop.permute.xlu1 %150  ;;  %v489_v47 = vpop.permute.xlu0 %148 }
  0xc6   :  { %v248_v42 = vsel %vm232_vm0, %v71_v38, %v487_v46  ;;  %v247_v43 = vsel %vm232_vm0, %v70_v39, %v489_v47 }
  0xc9   :  { %v187_v52 = vpop.permute.xlu1 %186  ;;  %v185_v53 = vpop.permute.xlu0 %184 }
  0xca   :  { %v251_v56 = vsel %vm249_vm1, %v234_v51, %v187_v52  ;;  %v250_v57 = vsel %vm249_vm1, %v233_v50, %v185_v53 }
  0xcb   :  { %268 = vst.msk [vmem:[#allocation8 + $0x8] sm:$0xff] %vm266_vm2, %v251_v56  ;;  %267 = vst.msk [vmem:[#allocation8] sm:$0xff] %vm266_vm2, %v250_v57 }
  0xcd   :  { %v191_v60 = vpop.permute.xlu1 %190  ;;  %v189_v61 = vpop.permute.xlu0 %188 }
  0xce   :  { %v253_v0 = vsel %vm249_vm1, %v236_v59, %v191_v60  ;;  %v252_v1 = vsel %vm249_vm1, %v235_v58, %v189_v61 }
  0xcf   :  { %270 = vst.msk [vmem:[#allocation8 + $0x18] sm:$0xff] %vm266_vm2, %v253_v0  ;;  %269 = vst.msk [vmem:[#allocation8 + $0x10] sm:$0xff] %vm266_vm2, %v252_v1 }
  0xd1   :  { %v195_v4 = vpop.permute.xlu1 %194  ;;  %v193_v5 = vpop.permute.xlu0 %192 }
  0xd2   :  { %v255_v8 = vsel %vm249_vm1, %v238_v2, %v195_v4  ;;  %v254_v9 = vsel %vm249_vm1, %v237_v3, %v193_v5 }
  0xd3   :  { %272 = vst.msk [vmem:[#allocation8 + $0x28] sm:$0xff] %vm266_vm2, %v255_v8  ;;  %271 = vst.msk [vmem:[#allocation8 + $0x20] sm:$0xff] %vm266_vm2, %v254_v9 }
  0xd5   :  { %v199_v12 = vpop.permute.xlu1 %198  ;;  %v197_v13 = vpop.permute.xlu0 %196 }
  0xd6   :  { %v257_v16 = vsel %vm249_vm1, %v240_v10, %v199_v12  ;;  %v256_v17 = vsel %vm249_vm1, %v239_v11, %v197_v13 }
  0xd7   :  { %274 = vst.msk [vmem:[#allocation8 + $0x38] sm:$0xff] %vm266_vm2, %v257_v16  ;;  %273 = vst.msk [vmem:[#allocation8 + $0x30] sm:$0xff] %vm266_vm2, %v256_v17 }
  0xd9   :  { %v203_v20 = vpop.permute.xlu1 %202  ;;  %v201_v21 = vpop.permute.xlu0 %200 }
  0xda   :  { %v259_v24 = vsel %vm249_vm1, %v242_v18, %v203_v20  ;;  %v258_v25 = vsel %vm249_vm1, %v241_v19, %v201_v21 }
  0xdb   :  { %276 = vst.msk [vmem:[#allocation8 + $0x48] sm:$0xff] %vm266_vm2, %v259_v24  ;;  %275 = vst.msk [vmem:[#allocation8 + $0x40] sm:$0xff] %vm266_vm2, %v258_v25 }
  0xdd   :  { %v207_v28 = vpop.permute.xlu1 %206  ;;  %v205_v29 = vpop.permute.xlu0 %204 }
  0xde   :  { %v261_v32 = vsel %vm249_vm1, %v244_v26, %v207_v28  ;;  %v260_v33 = vsel %vm249_vm1, %v243_v27, %v205_v29 }
  0xdf   :  { %278 = vst.msk [vmem:[#allocation8 + $0x58] sm:$0xff] %vm266_vm2, %v261_v32  ;;  %277 = vst.msk [vmem:[#allocation8 + $0x50] sm:$0xff] %vm266_vm2, %v260_v33 }
  0xe1   :  { %v211_v36 = vpop.permute.xlu1 %210  ;;  %v209_v37 = vpop.permute.xlu0 %208 }
  0xe2   :  { %v263_v40 = vsel %vm249_vm1, %v246_v34, %v211_v36  ;;  %v262_v41 = vsel %vm249_vm1, %v245_v35, %v209_v37 }
  0xe3   :  { %280 = vst.msk [vmem:[#allocation8 + $0x68] sm:$0xff] %vm266_vm2, %v263_v40  ;;  %279 = vst.msk [vmem:[#allocation8 + $0x60] sm:$0xff] %vm266_vm2, %v262_v41 }
  0xe5   :  { %v215_v44 = vpop.permute.xlu1 %214  ;;  %v213_v45 = vpop.permute.xlu0 %212 }
  0xe6   :  { %v265_v48 = vsel %vm249_vm1, %v248_v42, %v215_v44  ;;  %v264_v49 = vsel %vm249_vm1, %v247_v43, %v213_v45 }
  0xe7   :  { %282 = vst.msk [vmem:[#allocation8 + $0x78] sm:$0xff] %vm266_vm2, %v265_v48  ;;  %281 = vst.msk [vmem:[#allocation8 + $0x70] sm:$0xff] %vm266_vm2, %v264_v49 }
  0xe8   :  { %386 = shalt.err (!%p383_p0)
}
  0xe9   :  { %s387_s29 = scalar_lea.hbm %s561_s3, 2048 }
  0xea   :  { %p388_p1 = scmp.ne.s32.totalorder %s561_s3, %s387_s29  ;;  %p391_p2 = scmp.lt.u32.totalorder %s387_s29, %s561_s3 }
  0xec   :  { %p393_p3 = pnand %p391_p2, %p388_p1 }
  0xee   :  { %396 = shalt.err (!%p393_p3)
}
  0xef   :  { %294 = dma.vmem_to_hbm [thread:$0]  %s289_s23, 2048, %s561_s3, [#allocation4], %s405_s24, %s405_s24, %s406_s25  }
  0xf0   :  { %401 = dma.done.wait [#allocation4], 2048  }
  0xf1   :  { %402 = vsyncadd [#allocation4], 4294965248 }
  0xf2   :  { %298 = vsyncpa [#allocation3], 1 }
  0xf3   :  { %299 = vsyncpa [#allocation6], 1 }
  0xf4   :  { %300 = vsyncpa [#allocation4], 1 }

</bundles_post_ra>
